<compile_context>
chip_gen: v6e
topology: v6e:2x2x1
jax: 0.10.0
libtpu: 0.0.40
codegen_flags: <defaults>
</compile_context>

<pallas_src>
import jax
import jax.numpy as jnp
from jax.experimental import pallas as pl
from jax.experimental.pallas import tpu as pltpu


def _round_up(v, m):
    return ((v + m - 1) // m) * m


def _linear_kernel(x_ref, w_ref, b_ref, o_ref):
    # x_ref: (tm, K) activation tile, w_ref: (K, tn) resident weight,
    # b_ref: (1, tn) resident bias. MXU matmul with f32 accumulation;
    # bias-add epilogue runs in f32 on the VPU (v5e-safe), cast on store.
    acc = jnp.dot(x_ref[...], w_ref[...], preferred_element_type=jnp.float32)
    o_ref[...] = (acc + b_ref[...].astype(jnp.float32)).astype(o_ref.dtype)


def logistic_forward(x, w_t, b, *, block_m=256, block_n=512, compute_dtype=None):
    """Linear forward: x @ w_t + b.

    x:   [B, in_dim]
    w_t: [in_dim, out_dim]   (PyTorch weight [out, in], pre-transposed)
    b:   [out_dim]
    compute_dtype: optional dtype (e.g. jnp.bfloat16) for the matmul input
                   streams (v6e/v7x bandwidth + MXU-rate win); accumulation is
                   always f32 and the output keeps x.dtype.
    returns [B, out_dim]
    """
    B, K = x.shape
    K2, N = w_t.shape
    assert K == K2, "w_t must be [in_dim, out_dim]"
    assert b.shape == (N,)

    out_dtype = x.dtype

    # Optional cast of the two big streams only (output dtype unchanged).
    if compute_dtype is not None:
        x = x.astype(compute_dtype)
        w_t = w_t.astype(compute_dtype)

    # Batch: pad only to a multiple of 8 sublanes, and only when necessary.
    B_pad = _round_up(max(B, 1), 8)
    if B_pad != B:
        x_in = jnp.zeros((B_pad, K), dtype=x.dtype).at[:B, :].set(x)
    else:
        x_in = x

    b2 = b.reshape(1, N)

    # Tile sizes. tm capped (default 256) so mid-size batches give >= 2 grid
    # steps; N kept full-width when small (no lane padding, no extra slice).
    tm = min(block_m, B_pad)               # multiple of 8 (B_pad and block_m are)
    tn = N if N <= block_n else block_n    # full N, or a 128-multiple tile
    grid_m = pl.cdiv(B_pad, tm)
    grid_n = pl.cdiv(N, tn)

    # Weight/bias are truly resident (fetched once) only when grid_n == 1:
    # single-buffer them then to halve their VMEM footprint.
    resident = grid_n == 1

    # Scoped-VMEM budget from actual buffer footprints (VMEM pads the last two
    # dims of each tile to (8, 128) internally).
    def _tile_bytes(rows, cols, itemsize):
        return _round_up(rows, 8) * _round_up(cols, 128) * itemsize

    w_bufs = 1 if resident else 2
    needed = (
        2 * _tile_bytes(tm, K, x_in.dtype.itemsize)            # x double-buffered
        + w_bufs * _tile_bytes(K, tn, w_t.dtype.itemsize)      # weight
        + w_bufs * _tile_bytes(1, tn, b2.dtype.itemsize)       # bias
        + 2 * _tile_bytes(tm, tn, jnp.dtype(out_dtype).itemsize)  # output
    )
    # 2x headroom + slack, floor 8 MiB, cap 64 MiB (v7x-safe; below physical on all chips).
    vmem_limit = int(min(max(2 * needed + (4 << 20), 8 << 20), 64 << 20))

    def _build(single_buffer_resident):
        if single_buffer_resident:
            w_spec = pl.BlockSpec((K, tn), lambda i, j: (0, j),
                                  pipeline_mode=pl.Buffered(1))
            b_spec = pl.BlockSpec((1, tn), lambda i, j: (0, j),
                                  pipeline_mode=pl.Buffered(1))
        else:
            w_spec = pl.BlockSpec((K, tn), lambda i, j: (0, j))
            b_spec = pl.BlockSpec((1, tn), lambda i, j: (0, j))
        return pl.pallas_call(
            _linear_kernel,
            out_shape=jax.ShapeDtypeStruct((B_pad, N), out_dtype),
            grid_spec=pltpu.PrefetchScalarGridSpec(
                num_scalar_prefetch=0,
                grid=(grid_m, grid_n),
                in_specs=[
                    # Activation stream: tiled over batch -> pipelined DMA.
                    pl.BlockSpec((tm, K), lambda i, j: (i, 0)),
                    w_spec,   # weight: fetched once when grid_n == 1
                    b_spec,   # bias:   fetched once when grid_n == 1
                ],
                out_specs=pl.BlockSpec((tm, tn), lambda i, j: (i, j)),
            ),
            compiler_params=pltpu.CompilerParams(
                # Batch and N tiles are independent -> shard across TCs on v7x.
                dimension_semantics=("parallel", "parallel"),
                vmem_limit_bytes=vmem_limit,
            ),
        )

    try:
        out_p = _build(resident)(x_in, w_t, b2)
    except Exception:
        # pipeline_mode / pl.Buffered(1) unavailable on this jax version ->
        # fall back to default double-buffered specs (still correct).
        out_p = _build(False)(x_in, w_t, b2)

    return out_p if B_pad == B else out_p[:B]


if __name__ == "__main__":
    # Small shapes consistent with the module: batch=8, in_dim=32, out_dim=16.
    batch, in_dim, out_dim = 8, 32, 16

    key = jax.random.PRNGKey(0)
    kx, kw, kb = jax.random.split(key, 3)

    x = jax.random.normal(kx, (batch, in_dim), dtype=jnp.float32)

    # Deterministic parameter init (mimics nn.Linear's uniform(-1/sqrt(in), 1/sqrt(in))).
    bound = 1.0 / jnp.sqrt(jnp.float32(in_dim))
    w = jax.random.uniform(kw, (out_dim, in_dim), minval=-bound, maxval=bound,
                           dtype=jnp.float32)            # PyTorch layout [out, in]
    b = jax.random.uniform(kb, (out_dim,), minval=-bound, maxval=bound,
                           dtype=jnp.float32)

    w_t = w.T  # [in_dim, out_dim] kernel contract

    ref = x @ w.T + b

    # f32 path: exact vs. the plain-JAX reference of the PyTorch forward.
    logit = jax.block_until_ready(logistic_forward(x, w_t, b))
    assert logit.shape == (batch, out_dim)
    assert jnp.allclose(logit, ref, atol=1e-5, rtol=1e-5)

    # bf16-input path (v6e/v7x option): same kernel, looser tolerance.
    logit_bf16 = jax.block_until_ready(
        logistic_forward(x, w_t, b, compute_dtype=jnp.bfloat16))
    assert logit_bf16.shape == (batch, out_dim)
    assert logit_bf16.dtype == x.dtype
    assert jnp.allclose(logit_bf16, ref, atol=5e-2, rtol=5e-2)

    print("KERNEL_OK")
</pallas_src>

<mosaic_0001>
module attributes {stable_mosaic.version = 11 : i64} {
  func.func @_linear_kernel(%arg0: i32, %arg1: i32, %arg2: memref<8x32xf32, #tpu.memory_space<vmem>>, %arg3: memref<32x16xf32, #tpu.memory_space<vmem>>, %arg4: memref<1x16xf32, #tpu.memory_space<vmem>>, %arg5: memref<8x16xf32, #tpu.memory_space<vmem>>) attributes {dimension_semantics = [#tpu.dimension_semantics<parallel>, #tpu.dimension_semantics<parallel>], iteration_bounds = array<i64: 1, 1>, scalar_prefetch = 0 : i64, scratch_operands = 0 : i64, tpu.core_type = #tpu.core_type<tc>, window_params = [{transform_indices = @transform_0, window_bounds = array<i64: 8, 32>}, {pipeline_mode = #tpu.pipeline_mode<synchronous>, transform_indices = @transform_1, window_bounds = array<i64: 32, 16>}, {pipeline_mode = #tpu.pipeline_mode<synchronous>, transform_indices = @transform_2, window_bounds = array<i64: 1, 16>}, {transform_indices = @transform_3, window_bounds = array<i64: 8, 16>}]} {
    %c0 = arith.constant 0 : index
    %c0_0 = arith.constant 0 : index
    %0 = vector.load %arg2[%c0, %c0_0] : memref<8x32xf32, #tpu.memory_space<vmem>>, vector<8x32xf32>
    %c0_1 = arith.constant 0 : index
    %c0_2 = arith.constant 0 : index
    %1 = vector.load %arg3[%c0_1, %c0_2] : memref<32x16xf32, #tpu.memory_space<vmem>>, vector<32x16xf32>
    %cst = arith.constant dense<0.000000e+00> : vector<8x16xf32>
    %2 = tpu.matmul %0, %1, %cst {dimension_numbers = #tpu.dot_dimension_numbers<[1], [0], [0], [1], [0, 0, 1, 1], [], []>} : vector<8x32xf32>, vector<32x16xf32>, vector<8x16xf32> -> vector<8x16xf32>
    %c0_3 = arith.constant 0 : index
    %c0_4 = arith.constant 0 : index
    %3 = vector.load %arg4[%c0_3, %c0_4] : memref<1x16xf32, #tpu.memory_space<vmem>>, vector<1x16xf32>
    %4 = vector.broadcast %3 : vector<1x16xf32> to vector<8x16xf32>
    %5 = arith.addf %2, %4 : vector<8x16xf32>
    %c0_5 = arith.constant 0 : index
    %c0_6 = arith.constant 0 : index
    %6 = vector.load %arg5[%c0_5, %c0_6] : memref<8x16xf32, #tpu.memory_space<vmem>>, vector<8x16xf32>
    tpu.vector_store %arg5[%c0_5, %c0_6], %5 {strides = array<i32>} : memref<8x16xf32, #tpu.memory_space<vmem>>, vector<8x16xf32>,
    return
  }
  func.func @transform_0(%arg0: i32, %arg1: i32) -> (i32, i32) {
    %c0_i32 = arith.constant 0 : i32
    %c0_i32_0 = arith.constant 0 : i32
    return %arg0, %c0_i32 : i32, i32
  }
  func.func @transform_1(%arg0: i32, %arg1: i32) -> (i32, i32) {
    %c0_i32 = arith.constant 0 : i32
    %c0_i32_0 = arith.constant 0 : i32
    return %c0_i32, %arg1 : i32, i32
  }
  func.func @transform_2(%arg0: i32, %arg1: i32) -> (i32, i32) {
    %c0_i32 = arith.constant 0 : i32
    %c0_i32_0 = arith.constant 0 : i32
    return %c0_i32, %arg1 : i32, i32
  }
  func.func @transform_3(%arg0: i32, %arg1: i32) -> (i32, i32) {
    %c0_i32 = arith.constant 0 : i32
    return %arg0, %arg1 : i32, i32
  }
}

module attributes {stable_mosaic.version = 11 : i64} {
  func.func @_linear_kernel(%arg0: i32, %arg1: i32, %arg2: memref<8x32xf32, #tpu.memory_space<vmem>>, %arg3: memref<32x16xf32, #tpu.memory_space<vmem>>, %arg4: memref<1x16xf32, #tpu.memory_space<vmem>>, %arg5: memref<8x16xf32, #tpu.memory_space<vmem>>) attributes {dimension_semantics = [#tpu.dimension_semantics<parallel>, #tpu.dimension_semantics<parallel>], iteration_bounds = array<i64: 1, 1>, scalar_prefetch = 0 : i64, scratch_operands = 0 : i64, tpu.core_type = #tpu.core_type<tc>, window_params = [{transform_indices = @transform_0, window_bounds = array<i64: 8, 32>}, {transform_indices = @transform_1, window_bounds = array<i64: 32, 16>}, {transform_indices = @transform_2, window_bounds = array<i64: 1, 16>}, {transform_indices = @transform_3, window_bounds = array<i64: 8, 16>}]} {
    %c0 = arith.constant 0 : index
    %c0_0 = arith.constant 0 : index
    %0 = vector.load %arg2[%c0, %c0_0] : memref<8x32xf32, #tpu.memory_space<vmem>>, vector<8x32xf32>
    %c0_1 = arith.constant 0 : index
    %c0_2 = arith.constant 0 : index
    %1 = vector.load %arg3[%c0_1, %c0_2] : memref<32x16xf32, #tpu.memory_space<vmem>>, vector<32x16xf32>
    %cst = arith.constant dense<0.000000e+00> : vector<8x16xf32>
    %2 = tpu.matmul %0, %1, %cst {dimension_numbers = #tpu.dot_dimension_numbers<[1], [0], [0], [1], [0, 0, 1, 1], [], []>} : vector<8x32xf32>, vector<32x16xf32>, vector<8x16xf32> -> vector<8x16xf32>
    %c0_3 = arith.constant 0 : index
    %c0_4 = arith.constant 0 : index
    %3 = vector.load %arg4[%c0_3, %c0_4] : memref<1x16xf32, #tpu.memory_space<vmem>>, vector<1x16xf32>
    %4 = vector.broadcast %3 : vector<1x16xf32> to vector<8x16xf32>
    %5 = arith.addf %2, %4 : vector<8x16xf32>
    %c0_5 = arith.constant 0 : index
    %c0_6 = arith.constant 0 : index
    %6 = vector.load %arg5[%c0_5, %c0_6] : memref<8x16xf32, #tpu.memory_space<vmem>>, vector<8x16xf32>
    tpu.vector_store %arg5[%c0_5, %c0_6], %5 {strides = array<i32>} : memref<8x16xf32, #tpu.memory_space<vmem>>, vector<8x16xf32>,
    return
  }
  func.func @transform_0(%arg0: i32, %arg1: i32) -> (i32, i32) {
    %c0_i32 = arith.constant 0 : i32
    %c0_i32_0 = arith.constant 0 : i32
    return %arg0, %c0_i32 : i32, i32
  }
  func.func @transform_1(%arg0: i32, %arg1: i32) -> (i32, i32) {
    %c0_i32 = arith.constant 0 : i32
    %c0_i32_0 = arith.constant 0 : i32
    return %c0_i32, %arg1 : i32, i32
  }
  func.func @transform_2(%arg0: i32, %arg1: i32) -> (i32, i32) {
    %c0_i32 = arith.constant 0 : i32
    %c0_i32_0 = arith.constant 0 : i32
    return %c0_i32, %arg1 : i32, i32
  }
  func.func @transform_3(%arg0: i32, %arg1: i32) -> (i32, i32) {
    %c0_i32 = arith.constant 0 : i32
    return %arg0, %arg1 : i32, i32
  }
}

</mosaic_0001>

<bundles_post_ra>
// kernel: tpu_custom_call.1
= control target key start
LH: loop header
LB: loop body
LE: loop exit
PB: predicated region body
PF: predicated region fallthrough
CT: control target
= control target key end

     0   :  { %v160_v1 = vmov 0.0   ;;  %vm161_vm0 = vmmov 0   ;;  %s204_s0 = inlined_call_operand.vmem [shape: f32[8,32], index: 0, kind: input, shape index: {}]   ;;  %s205_s1 = inlined_call_operand.vmem [shape: f32[32,16], index: 1, kind: input, shape index: {}]   ;;  %s206_s2 = inlined_call_operand.vmem [shape: f32[1,16], index: 2, kind: input, shape index: {}]   ;;  %s207_s3 = inlined_call_operand.hbm [shape: f32[8,16], index: 3, kind: output, shape index: {}]  }
   0x1   :  { %v19_v0 = vld [vmem:[%s205_s1 + $0x18] sm:$0xff]  ;;  %124 = vmatprep.subr.mxu0 %v160_v1  ;;  %v18_v2 = vld [vmem:[%s205_s1 + $0x10] sm:$0xff]  ;;  %132 = vmatprep.mubr.msk.f32.mxu0 %vm161_vm0, %v160_v1 }
   0x2   :  { %125 = vmatpush3.msra.mxu0 %v19_v0 }
   0x3   :  { %8 = vsyncpa [#allocation3], 0  ;;  %126 = vmatprep.subr.mxu0 %v160_v1  ;;  %v17_v3 = vld [vmem:[%s205_s1 + $0x8] sm:$0xff]  ;;  %v16_v4 = vld [vmem:[%s205_s1] sm:$0xff]  ;;  %vm27_vm1 = vcmask 261120   ;;  %s162_s24 = smov [#allocation2]  }
   0x4   :  { %127 = vmatpush3.msra.mxu0 %v18_v2  ;;  %v15_v5 = vld [vmem:[%s204_s0] sm:$0xff]  ;;  %s109_s25 = sshll.u32 %s162_s24, 4  ;;  %vm101_vm2 = vcmask 130048   ;;  %s110_s25 = int_to_ptr.vmem [resolvable:$true] %s109_s25 }
   0x5   :  { %128 = vmatprep.subr.mxu0 %v160_v1  ;;  %v117_v6 = vld [vmem:[%s206_s2] ss:$0 sm:$0xff]  ;;  %s138_s1 = scalar_lea.vmem %s110_s25, 128  ;;  %p143_p1 = scmp.lt.s32.totalorder %s110_s25, %s110_s25 }
   0x6   :  { %129 = vmatpush3.msra.mxu0 %v17_v3  ;;  %p139_p0 = scmp.ne.s32.totalorder %s110_s25, %s138_s1  ;;  %p144_p2 = scmp.lt.s32.totalorder %s138_s1, %s138_s1 }
   0x7   :  { %130 = vmatprep.subr.mxu0 %v160_v1 }
   0x8   :  { %131 = vmatpush3.msra.mxu0 %v16_v4  ;;  %p145_p3 = por %p144_p2, %p143_p1 }
   0x9   :  { %133 = vmatmul.mubr.msk.f32.vlgmr.msra.gmra.mxu0 %vm27_vm1, %v15_v5 }
   0xa   :  { %p146_p4 = pnand %p145_p3, %p139_p0 }
  0xc9   :  { %v97_v7 = vpop.f32.mrf.mxu0 }
  0xca   :  { %v98_v8 = vadd.f32 %v117_v6, %v97_v7 }
  0xcb   :  { %v134_v9 = vpop.f32.mrf.mxu0 }
  0xcc   :  { %102 = vst.msk [vmem:[#allocation2] sm:$0xff] %vm101_vm2, %v98_v8 }
  0xcd   :  { %149 = shalt.err (!%p146_p4)
}
  0xce   :  { %112 = dma.vmem_to_hbm [thread:$0]  %s110_s25, 128, %s207_s3, [#allocation3]  }
  0xcf   :  { %158 = dma.done.wait [#allocation3], 128  }
  0xd0   :  { %159 = vsyncadd [#allocation3], 4294967168 }
  0xd1   :  { %116 = vsyncpa [#allocation3], 1 }

// kernel: tpu_custom_call.1
= control target key start
LH: loop header
LB: loop body
LE: loop exit
PB: predicated region body
PF: predicated region fallthrough
CT: control target
= control target key end

     0   :  { %v160_v1 = vmov 0.0   ;;  %vm161_vm0 = vmmov 0   ;;  %s204_s0 = inlined_call_operand.vmem [shape: f32[8,32], index: 0, kind: input, shape index: {}]   ;;  %s205_s1 = inlined_call_operand.vmem [shape: f32[32,16], index: 1, kind: input, shape index: {}]   ;;  %s206_s2 = inlined_call_operand.vmem [shape: f32[1,16], index: 2, kind: input, shape index: {}]   ;;  %s207_s3 = inlined_call_operand.hbm [shape: f32[8,16], index: 3, kind: output, shape index: {}]  }
   0x1   :  { %v19_v0 = vld [vmem:[%s205_s1 + $0x18] sm:$0xff]  ;;  %124 = vmatprep.subr.mxu0 %v160_v1  ;;  %v18_v2 = vld [vmem:[%s205_s1 + $0x10] sm:$0xff]  ;;  %132 = vmatprep.mubr.msk.f32.mxu0 %vm161_vm0, %v160_v1 }
   0x2   :  { %125 = vmatpush3.msra.mxu0 %v19_v0 }
   0x3   :  { %8 = vsyncpa [#allocation3], 0  ;;  %126 = vmatprep.subr.mxu0 %v160_v1  ;;  %v17_v3 = vld [vmem:[%s205_s1 + $0x8] sm:$0xff]  ;;  %v16_v4 = vld [vmem:[%s205_s1] sm:$0xff]  ;;  %vm27_vm1 = vcmask 261120   ;;  %s162_s24 = smov [#allocation2]  }
   0x4   :  { %127 = vmatpush3.msra.mxu0 %v18_v2  ;;  %v15_v5 = vld [vmem:[%s204_s0] sm:$0xff]  ;;  %s109_s25 = sshll.u32 %s162_s24, 4  ;;  %vm101_vm2 = vcmask 130048   ;;  %s110_s25 = int_to_ptr.vmem [resolvable:$true] %s109_s25 }
   0x5   :  { %128 = vmatprep.subr.mxu0 %v160_v1  ;;  %v117_v6 = vld [vmem:[%s206_s2] ss:$0 sm:$0xff]  ;;  %s138_s1 = scalar_lea.vmem %s110_s25, 128  ;;  %p143_p1 = scmp.lt.s32.totalorder %s110_s25, %s110_s25 }
   0x6   :  { %129 = vmatpush3.msra.mxu0 %v17_v3  ;;  %p139_p0 = scmp.ne.s32.totalorder %s110_s25, %s138_s1  ;;  %p144_p2 = scmp.lt.s32.totalorder %s138_s1, %s138_s1 }
   0x7   :  { %130 = vmatprep.subr.mxu0 %v160_v1 }
   0x8   :  { %131 = vmatpush3.msra.mxu0 %v16_v4  ;;  %p145_p3 = por %p144_p2, %p143_p1 }
   0x9   :  { %133 = vmatmul.mubr.msk.f32.vlgmr.msra.gmra.mxu0 %vm27_vm1, %v15_v5 }
   0xa   :  { %p146_p4 = pnand %p145_p3, %p139_p0 }
  0xc9   :  { %v97_v7 = vpop.f32.mrf.mxu0 }
  0xca   :  { %v98_v8 = vadd.f32 %v117_v6, %v97_v7 }
  0xcb   :  { %v134_v9 = vpop.f32.mrf.mxu0 }
  0xcc   :  { %102 = vst.msk [vmem:[#allocation2] sm:$0xff] %vm101_vm2, %v98_v8 }
  0xcd   :  { %149 = shalt.err (!%p146_p4)
}
  0xce   :  { %112 = dma.vmem_to_hbm [thread:$0]  %s110_s25, 128, %s207_s3, [#allocation3]  }
  0xcf   :  { %158 = dma.done.wait [#allocation3], 128  }
  0xd0   :  { %159 = vsyncadd [#allocation3], 4294967168 }
  0xd1   :  { %116 = vsyncpa [#allocation3], 1 }

</bundles_post_ra>
